<compile_context>
chip_gen: v7x
topology: tpu7x:2x2x1
jax: 0.10.0
libtpu: 0.0.40
codegen_flags: <defaults>
</compile_context>

<pallas_src>
import functools

import jax
import jax.numpy as jnp
from jax.experimental import pallas as pl
from jax.experimental.pallas import tpu as pltpu


def _round_up(n: int, m: int) -> int:
    return ((n + m - 1) // m) * m


def residual_block_kernel(x_ref, w1_ref, b1_ref, w2_ref, b2_ref, o_ref):
    # x tile: [TB, Fp] (f32 elementwise path).
    x = x_ref[...].astype(jnp.float32)

    # activation()
    h = jnp.maximum(x, 0.0)
    # nn.Linear(features, features): bf16 MXU operands, f32 accumulation.
    h = jnp.dot(h.astype(w1_ref.dtype), w1_ref[...],
                preferred_element_type=jnp.float32)
    h = h + b1_ref[...]
    # activation()
    h = jnp.maximum(h, 0.0)
    # nn.Dropout(p=0.0) -> identity
    # nn.Linear(features, features) (zero-initialized)
    h = jnp.dot(h.astype(w2_ref.dtype), w2_ref[...],
                preferred_element_type=jnp.float32)
    h = h + b2_ref[...]
    # residual add (pre-activation x)
    o_ref[...] = (x + h).astype(o_ref.dtype)


def prepare_params(w1, b1, w2, b2, compute_dtype=jnp.bfloat16):
    """One-time parameter prep: transpose to [in, out], pad features to a
    multiple of 128 (lane-dense), cast weights to the MXU compute dtype.

    w1, w2 come in PyTorch (out_features, in_features) layout; b1, b2 are [F].
    """
    f = w1.shape[0]
    fp = _round_up(f, 128)

    def prep_w(w):
        wt = jnp.transpose(w)                               # [in, out]
        wt = jnp.pad(wt, ((0, fp - f), (0, fp - f)))        # zero-pad both dims
        return wt.astype(compute_dtype)

    def prep_b(b):
        return jnp.pad(b.astype(jnp.float32), (0, fp - f)).reshape(1, fp)

    return prep_w(w1), prep_b(b1), prep_w(w2), prep_b(b2)


def residual_block(x, w1_t, b1_r, w2_t, b2_r):
    """x: [B, F]. w1_t/w2_t: [Fp, Fp] pre-transposed/padded (see prepare_params).
    b1_r/b2_r: [1, Fp]. Returns [B, F] in x.dtype."""
    B, F = x.shape
    Fp = w1_t.shape[0]

    # Batch tile: saturate the MXU M-dimension for large batches, otherwise the
    # smallest sublane-aligned tile that covers the batch (avoid padding waste).
    TB = 256 if B >= 256 else _round_up(B, 8)
    Bp = _round_up(B, TB)

    if Bp != B or Fp != F:
        x_p = jnp.pad(x, ((0, Bp - B), (0, Fp - F)))
    else:
        x_p = x

    # VMEM budget from the actual block footprint (weights conservatively
    # counted double-buffered), capped at 64 MiB (v7x physical VMEM).
    w_bytes = 2 * 2 * Fp * Fp * jnp.dtype(w1_t.dtype).itemsize
    b_bytes = 2 * 2 * Fp * 4
    xo_bytes = 2 * 2 * TB * Fp * x.dtype.itemsize
    vmem_limit = int(min(max(4 * (w_bytes + b_bytes + xo_bytes),
                             32 * 1024 * 1024),
                         64 * 1024 * 1024))

    grid = (Bp // TB,)
    out = pl.pallas_call(
        residual_block_kernel,
        out_shape=jax.ShapeDtypeStruct((Bp, Fp), x.dtype),
        grid=grid,
        in_specs=[
            pl.BlockSpec((TB, Fp), lambda i: (i, 0)),   # x: streamed over batch
            pl.BlockSpec((Fp, Fp), lambda i: (0, 0)),   # w1: VMEM-resident
            pl.BlockSpec((1, Fp), lambda i: (0, 0)),    # b1: VMEM-resident
            pl.BlockSpec((Fp, Fp), lambda i: (0, 0)),   # w2: VMEM-resident
            pl.BlockSpec((1, Fp), lambda i: (0, 0)),    # b2: VMEM-resident
        ],
        out_specs=pl.BlockSpec((TB, Fp), lambda i: (i, 0)),
        compiler_params=pltpu.CompilerParams(
            dimension_semantics=("parallel",),
            vmem_limit_bytes=vmem_limit,
        ),
    )(x_p, w1_t, b1_r, w2_t, b2_r)

    return out[:B, :F]


residual_block_jit = jax.jit(residual_block)


def reference(x, w1, b1, w2, b2):
    h = jnp.maximum(x, 0.0)
    h = h @ w1.T + b1
    h = jnp.maximum(h, 0.0)
    h = h @ w2.T + b2
    return x + h


if __name__ == "__main__":
    key = jax.random.PRNGKey(0)
    batch, features = 8, 32
    k_x, k_w1, k_b1, k_w2, k_b2 = jax.random.split(key, 5)

    x = jax.random.normal(k_x, (batch, features), dtype=jnp.float32)

    # Linear1: PyTorch default init ~ U(-1/sqrt(fan_in), 1/sqrt(fan_in))
    bound1 = 1.0 / jnp.sqrt(features)
    w1 = jax.random.uniform(k_w1, (features, features), jnp.float32, -bound1, bound1)
    b1 = jax.random.uniform(k_b1, (features,), jnp.float32, -bound1, bound1)

    # Linear2: zero_initialization=True -> U(-0.001, 0.001)
    w2 = jax.random.uniform(k_w2, (features, features), jnp.float32, -0.001, 0.001)
    b2 = jax.random.uniform(k_b2, (features,), jnp.float32, -0.001, 0.001)

    # One-time parameter prep (transpose + pad + bf16 cast), outside the hot path.
    params = prepare_params(w1, b1, w2, b2)

    out = residual_block_jit(x, *params)
    out = jax.block_until_ready(out)

    ref = reference(x, w1, b1, w2, b2)
    assert out.shape == (batch, features)
    # bf16 MXU operands -> slightly looser tolerance than pure-f32.
    assert jnp.allclose(out, ref, atol=2e-3, rtol=2e-3), "mismatch vs reference"

    print("KERNEL_OK")
</pallas_src>

<mosaic_0001>
module attributes {stable_mosaic.version = 11 : i64} {
  func.func @residual_block_kernel(%arg0: i32, %arg1: memref<8x128xf32, #tpu.memory_space<vmem>>, %arg2: memref<128x128xbf16, #tpu.memory_space<vmem>>, %arg3: memref<1x128xf32, #tpu.memory_space<vmem>>, %arg4: memref<128x128xbf16, #tpu.memory_space<vmem>>, %arg5: memref<1x128xf32, #tpu.memory_space<vmem>>, %arg6: memref<8x128xf32, #tpu.memory_space<vmem>>) attributes {dimension_semantics = [#tpu.dimension_semantics<parallel>], iteration_bounds = array<i64: 1>, scalar_prefetch = 0 : i64, scratch_operands = 0 : i64, tpu.core_type = #tpu.core_type<tc>, window_params = [{transform_indices = @transform_0, window_bounds = array<i64: 8, 128>}, {pipeline_mode = #tpu.pipeline_mode<synchronous>, transform_indices = @transform_1, window_bounds = array<i64: 128, 128>}, {pipeline_mode = #tpu.pipeline_mode<synchronous>, transform_indices = @transform_2, window_bounds = array<i64: 1, 128>}, {pipeline_mode = #tpu.pipeline_mode<synchronous>, transform_indices = @transform_3, window_bounds = array<i64: 128, 128>}, {pipeline_mode = #tpu.pipeline_mode<synchronous>, transform_indices = @transform_4, window_bounds = array<i64: 1, 128>}, {transform_indices = @transform_5, window_bounds = array<i64: 8, 128>}]} {
    %c0 = arith.constant 0 : index
    %c0_0 = arith.constant 0 : index
    %0 = vector.load %arg1[%c0, %c0_0] : memref<8x128xf32, #tpu.memory_space<vmem>>, vector<8x128xf32>
    %cst = arith.constant 0.000000e+00 : f32
    %1 = vector.broadcast %cst : f32 to vector<8x128xf32>
    %2 = arith.maximumf %0, %1 : vector<8x128xf32>
    %3 = arith.truncf %2 : vector<8x128xf32> to vector<8x128xbf16>
    %c0_1 = arith.constant 0 : index
    %c0_2 = arith.constant 0 : index
    %4 = vector.load %arg2[%c0_1, %c0_2] : memref<128x128xbf16, #tpu.memory_space<vmem>>, vector<128x128xbf16>
    %cst_3 = arith.constant dense<0.000000e+00> : vector<8x128xf32>
    %5 = tpu.matmul %3, %4, %cst_3 {dimension_numbers = #tpu.dot_dimension_numbers<[1], [0], [0], [1], [0, 0, 1, 1], [], []>} : vector<8x128xbf16>, vector<128x128xbf16>, vector<8x128xf32> -> vector<8x128xf32>
    %c0_4 = arith.constant 0 : index
    %c0_5 = arith.constant 0 : index
    %6 = vector.load %arg3[%c0_4, %c0_5] : memref<1x128xf32, #tpu.memory_space<vmem>>, vector<1x128xf32>
    %7 = vector.broadcast %6 : vector<1x128xf32> to vector<8x128xf32>
    %8 = arith.addf %5, %7 : vector<8x128xf32>
    %cst_6 = arith.constant 0.000000e+00 : f32
    %9 = vector.broadcast %cst_6 : f32 to vector<8x128xf32>
    %10 = arith.maximumf %8, %9 : vector<8x128xf32>
    %11 = arith.truncf %10 : vector<8x128xf32> to vector<8x128xbf16>
    %c0_7 = arith.constant 0 : index
    %c0_8 = arith.constant 0 : index
    %12 = vector.load %arg4[%c0_7, %c0_8] : memref<128x128xbf16, #tpu.memory_space<vmem>>, vector<128x128xbf16>
    %cst_9 = arith.constant dense<0.000000e+00> : vector<8x128xf32>
    %13 = tpu.matmul %11, %12, %cst_9 {dimension_numbers = #tpu.dot_dimension_numbers<[1], [0], [0], [1], [0, 0, 1, 1], [], []>} : vector<8x128xbf16>, vector<128x128xbf16>, vector<8x128xf32> -> vector<8x128xf32>
    %c0_10 = arith.constant 0 : index
    %c0_11 = arith.constant 0 : index
    %14 = vector.load %arg5[%c0_10, %c0_11] : memref<1x128xf32, #tpu.memory_space<vmem>>, vector<1x128xf32>
    %15 = vector.broadcast %14 : vector<1x128xf32> to vector<8x128xf32>
    %16 = arith.addf %13, %15 : vector<8x128xf32>
    %17 = arith.addf %0, %16 : vector<8x128xf32>
    %c0_12 = arith.constant 0 : index
    %c0_13 = arith.constant 0 : index
    %18 = vector.load %arg6[%c0_12, %c0_13] : memref<8x128xf32, #tpu.memory_space<vmem>>, vector<8x128xf32>
    tpu.vector_store %arg6[%c0_12, %c0_13], %17 {strides = array<i32>} : memref<8x128xf32, #tpu.memory_space<vmem>>, vector<8x128xf32>,
    return
  }
  func.func @transform_0(%arg0: i32) -> (i32, i32) {
    %c0_i32 = arith.constant 0 : i32
    %c0_i32_0 = arith.constant 0 : i32
    return %arg0, %c0_i32 : i32, i32
  }
  func.func @transform_1(%arg0: i32) -> (i32, i32) {
    %c0_i32 = arith.constant 0 : i32
    %c0_i32_0 = arith.constant 0 : i32
    %c0_i32_1 = arith.constant 0 : i32
    return %c0_i32, %c0_i32_0 : i32, i32
  }
  func.func @transform_2(%arg0: i32) -> (i32, i32) {
    %c0_i32 = arith.constant 0 : i32
    %c0_i32_0 = arith.constant 0 : i32
    %c0_i32_1 = arith.constant 0 : i32
    return %c0_i32, %c0_i32_0 : i32, i32
  }
  func.func @transform_3(%arg0: i32) -> (i32, i32) {
    %c0_i32 = arith.constant 0 : i32
    %c0_i32_0 = arith.constant 0 : i32
    %c0_i32_1 = arith.constant 0 : i32
    return %c0_i32, %c0_i32_0 : i32, i32
  }
  func.func @transform_4(%arg0: i32) -> (i32, i32) {
    %c0_i32 = arith.constant 0 : i32
    %c0_i32_0 = arith.constant 0 : i32
    %c0_i32_1 = arith.constant 0 : i32
    return %c0_i32, %c0_i32_0 : i32, i32
  }
  func.func @transform_5(%arg0: i32) -> (i32, i32) {
    %c0_i32 = arith.constant 0 : i32
    %c0_i32_0 = arith.constant 0 : i32
    return %arg0, %c0_i32 : i32, i32
  }
}

</mosaic_0001>

<bundles_post_ra>
// kernel: residual_block.1
= control target key start
LH: loop header
LB: loop body
LE: loop exit
PB: predicated region body
PF: predicated region fallthrough
CT: control target
= control target key end

     0   :  { %10 = vsyncpa [#allocation3], 0  ;;  %s548_s0 = inlined_call_operand.vmem [shape: f32[8,128], index: 0, kind: input, shape index: {}]   ;;  %s549_s1 = inlined_call_operand.hbm [shape: bf16[128,128], index: 1, kind: input, shape index: {}]   ;;  %s550_s2 = inlined_call_operand.vmem [shape: f32[1,128], index: 2, kind: input, shape index: {}]   ;;  %s551_s3 = inlined_call_operand.hbm [shape: bf16[128,128], index: 3, kind: input, shape index: {}]   ;;  %s552_s4 = inlined_call_operand.vmem [shape: f32[1,128], index: 4, kind: input, shape index: {}]   ;;  %s553_s5 = inlined_call_operand.hbm [shape: f32[8,128], index: 5, kind: output, shape index: {}]  }
   0x1   :  { %11 = vsyncpa [#allocation6], 0 }
   0x2   :  { %12 = vsyncpa [#allocation4], 0  ;;  %s466_s18 = smov [#allocation2]   ;;  %s394_s22 = scalar_lea.hbm %s549_s1, 1024 }
   0x3   :  { %s20_s19 = sshll.u32 %s466_s18, 4  ;;  %p395_p0 = scmp.ne.s32.totalorder %s549_s1, %s394_s22  ;;  %s21_s19 = int_to_ptr.vmem [resolvable:$true] %s20_s19 }
   0x4   :  { %p398_p1 = scmp.lt.u32.totalorder %s394_s22, %s549_s1 }
   0x6   :  { %p400_p2 = pnand %p398_p1, %p395_p0 }
   0x8   :  { %403 = shalt.err (!%p400_p2)
}
   0x9   :  { %s404_s27 = scalar_lea.vmem %s21_s19, 1024  ;;  %p409_p4 = scmp.lt.s32.totalorder %s21_s19, %s21_s19 }
   0xa   :  { %p405_p3 = scmp.ne.s32.totalorder %s21_s19, %s404_s27  ;;  %p410_p5 = scmp.lt.s32.totalorder %s404_s27, %s404_s27 }
   0xc   :  { %p411_p6 = por %p410_p5, %p409_p4 }
   0xe   :  { %p412_p7 = pnand %p411_p6, %p405_p3 }
  0x10   :  { %415 = shalt.err (!%p412_p7)
}
  0x11   :  { %s467_s28 = smov 64   ;;  %s468_s29 = smov 4  }
  0x12   :  { %26 = dma.hbm_to_vmem [thread:$0]  %s549_s1, 1024, %s21_s19, [#allocation3], %s467_s28, %s467_s28, %s468_s29  }
  0x13   :  { %s469_s7 = smov [#allocation5]   ;;  %s416_s11 = scalar_lea.hbm %s551_s3, 1024 }
  0x14   :  { %s34_s8 = sshll.u32 %s469_s7, 4  ;;  %p417_p8 = scmp.ne.s32.totalorder %s551_s3, %s416_s11  ;;  %s35_s8 = int_to_ptr.vmem [resolvable:$true] %s34_s8 }
  0x15   :  { %p420_p9 = scmp.lt.u32.totalorder %s416_s11, %s551_s3 }
  0x17   :  { %p422_p10 = pnand %p420_p9, %p417_p8 }
  0x19   :  { %425 = shalt.err (!%p422_p10)
}
  0x1a   :  { %s426_s16 = scalar_lea.vmem %s35_s8, 1024  ;;  %p431_p12 = scmp.lt.s32.totalorder %s35_s8, %s35_s8 }
  0x1b   :  { %p427_p11 = scmp.ne.s32.totalorder %s35_s8, %s426_s16  ;;  %p432_p13 = scmp.lt.s32.totalorder %s426_s16, %s426_s16 }
  0x1d   :  { %p433_p0 = por %p432_p13, %p431_p12 }
  0x1f   :  { %p434_p1 = pnand %p433_p0, %p427_p11 }
  0x21   :  { %437 = shalt.err (!%p434_p1)
}
  0x22   :  { %40 = dma.hbm_to_vmem [thread:$0]  %s551_s3, 1024, %s35_s8, [#allocation6], %s467_s28, %s467_s28, %s468_s29  }
  0x23   :  { %460 = dma.done.wait [#allocation3], 1024  }
  0x24   :  { %461 = vsyncadd [#allocation3], 4294966272 }
  0x25   :  { %462 = dma.done.wait [#allocation6], 1024  }
  0x26   :  { %463 = vsyncadd [#allocation6], 4294966272  ;;  %v470_v0 = vmov 0.0   ;;  %vm471_vm0 = vmmov 0   ;;  %v378_v1 = vld [vmem:[#allocation2] sm:$0xff]   ;;  %v379_v2 = vld [vmem:[#allocation2 + $0x8] sm:$0xff]  }
  0x27   :  { %331 = vmatprep.subr.bf16.mxu0 %v470_v0  ;;  %347 = vmatprep.mubr.msk.bf16.mxu0 %vm471_vm0, %v470_v0  ;;  %v380_v3 = vld [vmem:[#allocation2 + $0x10] sm:$0xff]   ;;  %v386_v4 = vld [vmem:[#allocation5] sm:$0xff]   ;;  %v381_v5 = vld [vmem:[#allocation2 + $0x18] sm:$0xff]   ;;  %s472_s22 = smov [#allocation7]  }
  0x28   :  { %351 = vmatprep.subr.bf16.mxu1 %v470_v0  ;;  %367 = vmatprep.mubr.msk.bf16.mxu1 %vm471_vm0, %v470_v0  ;;  %v387_v6 = vld [vmem:[#allocation5 + $0x8] sm:$0xff]   ;;  %v382_v7 = vld [vmem:[#allocation2 + $0x20] sm:$0xff]   ;;  %v388_v8 = vld [vmem:[#allocation5 + $0x10] sm:$0xff]   ;;  %s285_s23 = sshll.u32 %s472_s22, 4  ;;  %s286_s23 = int_to_ptr.vmem [resolvable:$true] %s285_s23 }
  0x29   :  { %332 = vmatpush3.bf16.msra.mxu0 %v378_v1  ;;  %352 = vmatpush3.bf16.msra.mxu1 %v386_v4  ;;  %v383_v9 = vld [vmem:[#allocation2 + $0x28] sm:$0xff]   ;;  %v389_v10 = vld [vmem:[#allocation5 + $0x18] sm:$0xff]   ;;  %v384_v11 = vld [vmem:[#allocation2 + $0x30] sm:$0xff]   ;;  %p443_p3 = scmp.lt.s32.totalorder %s286_s23, %s286_s23 }
  0x2a   :  { %333 = vmatprep.subr.bf16.mxu0 %v470_v0  ;;  %353 = vmatprep.subr.bf16.mxu1 %v470_v0  ;;  %v50_v12 = vld [vmem:[%s548_s0] sm:$0xff]  ;;  %v390_v13 = vld [vmem:[#allocation5 + $0x20] sm:$0xff]   ;;  %v391_v16 = vld [vmem:[#allocation5 + $0x28] sm:$0xff]  }
  0x2b   :  { %v51_v14 = vmax.f32 %v50_v12, 0.0  ;;  %v385_v15 = vld [vmem:[#allocation2 + $0x38] sm:$0xff]   ;;  %v392_v18 = vld [vmem:[#allocation5 + $0x30] sm:$0xff]  }
  0x2c   :  { %v393_v19 = vld [vmem:[#allocation5 + $0x38] sm:$0xff]  }
  0x2d   :  { %334 = vmatpush3.bf16.msra.mxu0 %v379_v2  ;;  %354 = vmatpush3.bf16.msra.mxu1 %v387_v6  ;;  %v52_v17 = vpack.c.bf16 %v51_v14, %v51_v14  ;;  %v295_v20 = vld [vmem:[%s550_s2] ss:$0 sm:$0xff]  ;;  %s438_s2 = scalar_lea.vmem %s286_s23, 128 }
  0x2e   :  { %335 = vmatprep.subr.bf16.mxu0 %v470_v0  ;;  %355 = vmatprep.subr.bf16.mxu1 %v470_v0  ;;  %v304_v28 = vld [vmem:[%s552_s4] ss:$0 sm:$0xff]  ;;  %p439_p2 = scmp.ne.s32.totalorder %s286_s23, %s438_s2  ;;  %p444_p4 = scmp.lt.s32.totalorder %s438_s2, %s438_s2 }
  0x30   :  { %p445_p5 = por %p444_p4, %p443_p3 }
  0x31   :  { %336 = vmatpush3.bf16.msra.mxu0 %v380_v3  ;;  %356 = vmatpush3.bf16.msra.mxu1 %v388_v8 }
  0x32   :  { %337 = vmatprep.subr.bf16.mxu0 %v470_v0  ;;  %357 = vmatprep.subr.bf16.mxu1 %v470_v0  ;;  %p446_p6 = pnand %p445_p5, %p439_p2 }
  0x35   :  { %338 = vmatpush3.bf16.msra.mxu0 %v381_v5  ;;  %358 = vmatpush3.bf16.msra.mxu1 %v389_v10 }
  0x36   :  { %339 = vmatprep.subr.bf16.mxu0 %v470_v0  ;;  %359 = vmatprep.subr.bf16.mxu1 %v470_v0 }
  0x39   :  { %340 = vmatpush3.bf16.msra.mxu0 %v382_v7  ;;  %360 = vmatpush3.bf16.msra.mxu1 %v390_v13 }
  0x3a   :  { %341 = vmatprep.subr.bf16.mxu0 %v470_v0  ;;  %361 = vmatprep.subr.bf16.mxu1 %v470_v0 }
  0x3d   :  { %342 = vmatpush3.bf16.msra.mxu0 %v383_v9  ;;  %362 = vmatpush3.bf16.msra.mxu1 %v391_v16 }
  0x3e   :  { %343 = vmatprep.subr.bf16.mxu0 %v470_v0  ;;  %363 = vmatprep.subr.bf16.mxu1 %v470_v0 }
  0x41   :  { %344 = vmatpush3.bf16.msra.mxu0 %v384_v11  ;;  %364 = vmatpush3.bf16.msra.mxu1 %v392_v18 }
  0x42   :  { %345 = vmatprep.subr.bf16.mxu0 %v470_v0  ;;  %365 = vmatprep.subr.bf16.mxu1 %v470_v0 }
  0x45   :  { %346 = vmatpush3.bf16.msra.mxu0 %v385_v15  ;;  %366 = vmatpush3.bf16.msra.mxu1 %v393_v19 }
  0x48   :  { %348 = vmatmul.mubr.bf16.vlgmr.msra.gmra.mrb[0].mxu0 %v52_v17 }
 0x11b   :  { %v158_v21 = vpop.f32.mrb[0].mxu0 }
 0x11c   :  { %v159_v22 = vadd.f32 %v295_v20, %v158_v21  ;;  %v349_v23 = vpop.f32.mrb[1].mxu0 }
 0x11d   :  { %v161_v24 = vpop.f32.mrb[2].mxu0 }
 0x11e   :  { %v164_v25 = vmax.f32 %v159_v22, 0.0  ;;  %v350_v26 = vpop.f32.mrb[3].mxu0 }
 0x120   :  { %v165_v27 = vpack.c.bf16 %v164_v25, %v164_v25 }
 0x122   :  { %368 = vmatmul.mubr.bf16.vlgmr.msra.gmra.mrb[0].mxu1 %v165_v27 }
 0x1f5   :  { %v271_v29 = vpop.f32.mrb[0].mxu1 }
 0x1f6   :  { %v272_v30 = vadd.f32 %v304_v28, %v271_v29  ;;  %v369_v31 = vpop.f32.mrb[1].mxu1 }
 0x1f7   :  { %v274_v32 = vpop.f32.mrb[2].mxu1 }
 0x1f8   :  { %v277_v33 = vadd.f32 %v272_v30, %v50_v12  ;;  %v370_v34 = vpop.f32.mrb[3].mxu1 }
 0x1fa   :  { %278 = vst [vmem:[#allocation7] sm:$0xff] %v277_v33 }
 0x1fb   :  { %449 = shalt.err (!%p446_p6)
}
 0x1fc   :  { %s450_s4 = scalar_lea.hbm %s553_s5, 128 }
 0x1fd   :  { %p451_p7 = scmp.ne.s32.totalorder %s553_s5, %s450_s4  ;;  %p454_p8 = scmp.lt.u32.totalorder %s450_s4, %s553_s5 }
 0x1ff   :  { %p456_p9 = pnand %p454_p8, %p451_p7 }
 0x201   :  { %459 = shalt.err (!%p456_p9)
}
 0x202   :  { %288 = dma.vmem_to_hbm [thread:$0]  %s286_s23, 128, %s553_s5, [#allocation4]  }
 0x203   :  { %464 = dma.done.wait [#allocation4], 128  }
 0x204   :  { %465 = vsyncadd [#allocation4], 4294967168 }
 0x205   :  { %292 = vsyncpa [#allocation3], 1 }
 0x206   :  { %293 = vsyncpa [#allocation6], 1 }
 0x207   :  { %294 = vsyncpa [#allocation4], 1 }

</bundles_post_ra>
